<compile_context>
chip_gen: v7x
topology: tpu7x:2x2x1
jax: 0.10.0
libtpu: 0.0.40
codegen_flags: <defaults>
</compile_context>

<pallas_src>
import math

import numpy as np

import jax
import jax.numpy as jnp
from jax.experimental import pallas as pl
from jax.experimental.pallas import tpu as pltpu


def _data_embedding_kernel(x_ref, w_ref, pe_ref, o_ref):
    # x_ref:  (1, L, C) VMEM   one batch element
    # w_ref:  (3, C, D) VMEM   w_ref[k] == conv_weight[:, :, k].T  (resident)
    # pe_ref: (L, D)    VMEM   fixed sinusoidal table rows 0..L-1   (resident)
    # o_ref:  (1, L, D) VMEM
    _, L, _ = x_ref.shape

    x = x_ref[0]                                    # (L, C) f32
    # Circular neighbours along the sequence axis (static sublane rotations).
    x_prev = pltpu.roll(x, shift=1, axis=0)         # x[(t - 1) mod L]
    x_next = pltpu.roll(x, shift=L - 1, axis=0)     # x[(t + 1) mod L]

    # TokenEmbedding: y[t, d] = sum_k sum_c W[d, c, k] * x[(t + k - 1) mod L, c]
    acc = jnp.dot(x_prev, w_ref[0], preferred_element_type=jnp.float32)
    acc = acc + jnp.dot(x, w_ref[1], preferred_element_type=jnp.float32)
    acc = acc + jnp.dot(x_next, w_ref[2], preferred_element_type=jnp.float32)

    # Dropout(p=0.1) is identity in eval mode.
    # TODO(synk): training-mode stochastic dropout (pltpu.prng_*) not implemented.
    o_ref[0] = (acc + pe_ref[...]).astype(o_ref.dtype)


def _build_pe_table(L, D):
    """Exact numpy port of the PyTorch PositionalEmbedding buffer (rows 0..L-1)."""
    position = np.arange(L, dtype=np.float32)[:, None]                       # (L, 1)
    div_term = np.exp(np.arange(0, D, 2, dtype=np.float32) *
                      -(math.log(10000.0) / D))                              # (D/2,)
    pe = np.zeros((L, D), np.float32)
    pe[:, 0::2] = np.sin(position * div_term)
    pe[:, 1::2] = np.cos(position * div_term)
    return pe


def data_embedding_wo_temp(x, x_mark, conv_weight):
    """Pallas forward of DataEmbedding_wo_temp (eval mode).

    x:           (B, L, c_in) float32
    x_mark:      ignored (the PyTorch forward never reads it)
    conv_weight: (d_model, c_in, 3) float32  -- PyTorch Conv1d weight layout
    returns:     (B, L, d_model) float32
    """
    del x_mark
    B, L, C = x.shape
    D, C_w, K = conv_weight.shape
    assert C_w == C and K == 3, "conv_weight must be (d_model, c_in, 3)"
    assert D % 2 == 0, "d_model must be even (same restriction as PyTorch PE)"
    assert L <= 5000, "sequence length exceeds PositionalEmbedding max_len"

    # Repack Conv1d weight (D, C, 3) -> (3, C, D): w[k] = W[:, :, k].T, so the
    # in-kernel matmul outputs are lane-dense over d_model.
    w = jnp.transpose(conv_weight, (2, 1, 0)).astype(jnp.float32)
    # Fixed positional-embedding table (host-side constant, like the PyTorch buffer).
    pe = jnp.asarray(_build_pe_table(L, D))

    return pl.pallas_call(
        _data_embedding_kernel,
        out_shape=jax.ShapeDtypeStruct((B, L, D), jnp.float32),
        grid=(B,),
        in_specs=[
            pl.BlockSpec((1, L, C), lambda b: (b, 0, 0)),   # per-batch slice of x
            pl.BlockSpec((3, C, D), lambda b: (0, 0, 0)),   # weights stay resident
            pl.BlockSpec((L, D),    lambda b: (0, 0)),      # PE table stays resident
        ],
        out_specs=pl.BlockSpec((1, L, D), lambda b: (b, 0, 0)),
        compiler_params=pltpu.CompilerParams(
            dimension_semantics=("parallel",)),
    )(x.astype(jnp.float32), w, pe)


def _reference(x, conv_weight, max_len=5000):
    """Pure-JAX port of the PyTorch module (eval mode) for verification."""
    B, L, C = x.shape
    D = conv_weight.shape[0]
    # Circular Conv1d, kernel_size=3, padding=1, no bias.
    xp = jnp.concatenate([x[:, -1:, :], x, x[:, :1, :]], axis=1)        # (B, L+2, C)
    y = jnp.zeros((B, L, D), jnp.float32)
    for k in range(3):
        y = y + jnp.einsum("blc,dc->bld", xp[:, k:k + L, :], conv_weight[:, :, k],
                           preferred_element_type=jnp.float32)
    # Sinusoidal positional embedding (exact PyTorch construction).
    position = jnp.arange(max_len, dtype=jnp.float32)[:, None]
    div_term = jnp.exp(jnp.arange(0, D, 2, dtype=jnp.float32) *
                       -(math.log(10000.0) / D))
    pe = jnp.zeros((max_len, D), jnp.float32)
    pe = pe.at[:, 0::2].set(jnp.sin(position * div_term))
    pe = pe.at[:, 1::2].set(jnp.cos(position * div_term))
    return y + pe[None, :L, :]


if __name__ == "__main__":
    key = jax.random.PRNGKey(0)
    kx, kw = jax.random.split(key)

    B, L, C, D = 2, 16, 4, 32               # batch, seq, c_in, d_model
    x = jax.random.normal(kx, (B, L, C), dtype=jnp.float32)
    x_mark = jnp.zeros((B, L, 4), dtype=jnp.float32)         # unused by forward
    # Kaiming-normal-style Conv1d weight init (exact init does not affect the
    # forward math being verified).
    fan_in = C * 3
    conv_weight = jax.random.normal(kw, (D, C, 3), dtype=jnp.float32) * math.sqrt(2.0 / fan_in)

    out = jax.block_until_ready(data_embedding_wo_temp(x, x_mark, conv_weight))
    ref = _reference(x, conv_weight)

    assert out.shape == (B, L, D), out.shape
    assert jnp.allclose(out, ref, atol=1e-2, rtol=1e-2), float(jnp.max(jnp.abs(out - ref)))
    print("KERNEL_OK")
</pallas_src>

<mosaic_0001>
module attributes {stable_mosaic.version = 11 : i64} {
  func.func @_data_embedding_kernel(%arg0: i32, %arg1: memref<1x16x4xf32, #tpu.memory_space<vmem>>, %arg2: memref<3x4x32xf32, #tpu.memory_space<vmem>>, %arg3: memref<16x32xf32, #tpu.memory_space<vmem>>, %arg4: memref<1x16x32xf32, #tpu.memory_space<vmem>>) attributes {dimension_semantics = [#tpu.dimension_semantics<parallel>], iteration_bounds = array<i64: 2>, scalar_prefetch = 0 : i64, scratch_operands = 0 : i64, tpu.core_type = #tpu.core_type<tc>, window_params = [{transform_indices = @transform_0, window_bounds = array<i64: 1, 16, 4>}, {pipeline_mode = #tpu.pipeline_mode<synchronous>, transform_indices = @transform_1, window_bounds = array<i64: 3, 4, 32>}, {pipeline_mode = #tpu.pipeline_mode<synchronous>, transform_indices = @transform_2, window_bounds = array<i64: 16, 32>}, {transform_indices = @transform_3, window_bounds = array<i64: 1, 16, 32>}]} {
    %c0 = arith.constant 0 : index
    %c0_0 = arith.constant 0 : index
    %c0_1 = arith.constant 0 : index
    %0 = vector.load %arg1[%c0, %c0_0, %c0_1] : memref<1x16x4xf32, #tpu.memory_space<vmem>>, vector<1x16x4xf32>
    %1 = vector.shape_cast %0 : vector<1x16x4xf32> to vector<16x4xf32>
    %c1_i32 = arith.constant 1 : i32
    %2 = tpu.dynamic_rotate %1 by %c1_i32 dim 0 : vector<16x4xf32>, i32 -> vector<16x4xf32>
    %c15_i32 = arith.constant 15 : i32
    %3 = tpu.dynamic_rotate %1 by %c15_i32 dim 0 : vector<16x4xf32>, i32 -> vector<16x4xf32>
    %c0_2 = arith.constant 0 : index
    %c0_3 = arith.constant 0 : index
    %c0_4 = arith.constant 0 : index
    %4 = vector.load %arg2[%c0_2, %c0_3, %c0_4] : memref<3x4x32xf32, #tpu.memory_space<vmem>>, vector<1x4x32xf32>
    %5 = vector.shape_cast %4 : vector<1x4x32xf32> to vector<4x32xf32>
    %cst = arith.constant dense<0.000000e+00> : vector<16x32xf32>
    %6 = tpu.matmul %2, %5, %cst {dimension_numbers = #tpu.dot_dimension_numbers<[1], [0], [0], [1], [0, 0, 1, 1], [], []>} : vector<16x4xf32>, vector<4x32xf32>, vector<16x32xf32> -> vector<16x32xf32>
    %c1 = arith.constant 1 : index
    %c0_5 = arith.constant 0 : index
    %c0_6 = arith.constant 0 : index
    %7 = vector.load %arg2[%c1, %c0_5, %c0_6] : memref<3x4x32xf32, #tpu.memory_space<vmem>>, vector<1x4x32xf32>
    %8 = vector.shape_cast %7 : vector<1x4x32xf32> to vector<4x32xf32>
    %cst_7 = arith.constant dense<0.000000e+00> : vector<16x32xf32>
    %9 = tpu.matmul %1, %8, %cst_7 {dimension_numbers = #tpu.dot_dimension_numbers<[1], [0], [0], [1], [0, 0, 1, 1], [], []>} : vector<16x4xf32>, vector<4x32xf32>, vector<16x32xf32> -> vector<16x32xf32>
    %10 = arith.addf %6, %9 : vector<16x32xf32>
    %c2 = arith.constant 2 : index
    %c0_8 = arith.constant 0 : index
    %c0_9 = arith.constant 0 : index
    %11 = vector.load %arg2[%c2, %c0_8, %c0_9] : memref<3x4x32xf32, #tpu.memory_space<vmem>>, vector<1x4x32xf32>
    %12 = vector.shape_cast %11 : vector<1x4x32xf32> to vector<4x32xf32>
    %cst_10 = arith.constant dense<0.000000e+00> : vector<16x32xf32>
    %13 = tpu.matmul %3, %12, %cst_10 {dimension_numbers = #tpu.dot_dimension_numbers<[1], [0], [0], [1], [0, 0, 1, 1], [], []>} : vector<16x4xf32>, vector<4x32xf32>, vector<16x32xf32> -> vector<16x32xf32>
    %14 = arith.addf %10, %13 : vector<16x32xf32>
    %c0_11 = arith.constant 0 : index
    %c0_12 = arith.constant 0 : index
    %15 = vector.load %arg3[%c0_11, %c0_12] : memref<16x32xf32, #tpu.memory_space<vmem>>, vector<16x32xf32>
    %16 = arith.addf %14, %15 : vector<16x32xf32>
    %c0_13 = arith.constant 0 : index
    %c0_14 = arith.constant 0 : index
    %c0_15 = arith.constant 0 : index
    %17 = vector.load %arg4[%c0_13, %c0_14, %c0_15] : memref<1x16x32xf32, #tpu.memory_space<vmem>>, vector<1x16x32xf32>
    %18 = vector.shape_cast %17 : vector<1x16x32xf32> to vector<16x32xf32>
    %19 = vector.shape_cast %16 : vector<16x32xf32> to vector<1x16x32xf32>
    tpu.vector_store %arg4[%c0_13, %c0_14, %c0_15], %19 {strides = array<i32>} : memref<1x16x32xf32, #tpu.memory_space<vmem>>, vector<1x16x32xf32>,
    return
  }
  func.func @transform_0(%arg0: i32) -> (i32, i32, i32) {
    %c0_i32 = arith.constant 0 : i32
    %c0_i32_0 = arith.constant 0 : i32
    %c0_i32_1 = arith.constant 0 : i32
    return %arg0, %c0_i32, %c0_i32_0 : i32, i32, i32
  }
  func.func @transform_1(%arg0: i32) -> (i32, i32, i32) {
    %c0_i32 = arith.constant 0 : i32
    %c0_i32_0 = arith.constant 0 : i32
    %c0_i32_1 = arith.constant 0 : i32
    %c0_i32_2 = arith.constant 0 : i32
    return %c0_i32, %c0_i32_0, %c0_i32_1 : i32, i32, i32
  }
  func.func @transform_2(%arg0: i32) -> (i32, i32) {
    %c0_i32 = arith.constant 0 : i32
    %c0_i32_0 = arith.constant 0 : i32
    %c0_i32_1 = arith.constant 0 : i32
    return %c0_i32, %c0_i32_0 : i32, i32
  }
  func.func @transform_3(%arg0: i32) -> (i32, i32, i32) {
    %c0_i32 = arith.constant 0 : i32
    %c0_i32_0 = arith.constant 0 : i32
    %c0_i32_1 = arith.constant 0 : i32
    return %arg0, %c0_i32, %c0_i32_0 : i32, i32, i32
  }
}

</mosaic_0001>

<bundles_post_ra>
// kernel: tpu_custom_call.1
= control target key start
LH: loop header
LB: loop body
LE: loop exit
PB: predicated region body
PF: predicated region fallthrough
CT: control target
= control target key end

     0   :  { %8 = vsyncpa [#allocation3], 0  ;;  %s838_s0 = inlined_call_operand.vmem [shape: f32[2,16,4], index: 0, kind: input, shape index: {}]   ;;  %s839_s1 = inlined_call_operand.vmem [shape: f32[3,4,32], index: 1, kind: input, shape index: {}]   ;;  %s840_s2 = inlined_call_operand.vmem [shape: f32[16,32], index: 2, kind: input, shape index: {}]   ;;  %s841_s3 = inlined_call_operand.hbm [shape: f32[2,16,32], index: 3, kind: output, shape index: {}]  }
   0x1   :  { %10 = vsyncpa [#allocation3 + $0x1], 0  ;;  %s708_s12 = smov 0   ;;  %s710_s13 = smov 0  }
   0x2   :  { %s712_s14 = smov 0   ;;  %s714_s15 = smov 0  }
   0x3 LB: > { %s729_s16 = sadd.s32 4294967295, %s683_s15   ;;  %s527_s17 = sadd.s32 4294967294, %s683_s15   ;;  %s683_s15 = sphi %s714_s15, %s847_s15   ;;  %s679_s14 = sphi %s712_s14, %s846_s14   ;;  %s675_s13 = sphi %s710_s13, %s845_s13   ;;  %s671_s12 = sphi %s708_s12, %s844_s12  }
   0x4   : > { %s733_s18 = sadd.s32 1, %s683_s15   ;;  %s91_s19 = sadd.s32 1, %s679_s14 }
   0x5   : > { %s88_s20 = ssub.s32 %s683_s15, %s733_s18  ;;  %p101_p0 = scmp.ne.s32.totalorder %s679_s14, %s675_s13 }
   0x6   : > { %p89_p1 = scmp.eq.s32.totalorder %s88_s20, 0  ;;  %p102_p2 = scmp.eq.s32.totalorder %s729_s16, 1 }
   0x7   : > { %p107_p3 = scmp.ne.s32.totalorder %s675_s13, %s671_s12  ;;  %p108_p4 = scmp.eq.s32.totalorder %s527_s17, 1 }
   0x8   : > { %s744_s21 = scalar_select %p89_p1, %s679_s14, %s91_s19  }
   0x9   : > { %p746_p5 = por %p102_p2, %p101_p0  ;;  %p750_p6 = por %p108_p4, %p107_p3 }
   0xa   : > { %p530_p7 = scmp.ge.s32.totalorder %s683_s15, 1  ;;  %p140_p8 = scmp.lt.s32.totalorder %s683_s15, 3 }
   0xc   : > { %p141_p9 = pnand %p530_p7, %p140_p8 }
   0xd   : > { %v183_v0 = vld [vmem:[%s839_s1] sm:$0xf] (!%p141_p9)  ;;  %vm193_vm0 = vcmask (!%p141_p9), 1043456   ;;  %p164_p10 = scmp.lt.s32.totalorder (!%p141_p9), %s729_s16, 1  ;;  %v173_v1 = vlaneseq (!%p141_p9)  ;;  %v541_v2 = vld [vmem:[%s839_s1 + $0x8] sm:$0xf] (!%p141_p9) }
   0xe   : > { %144 = sbr.rel (%p141_p9) target bundleno = 270 (0x10e), region = 32  ;;  %566 = vmatprep.subr.msk.mxu0 (!%p141_p9), %vm193_vm0, %v183_v0  ;;  %v534_v3 = vld [vmem:[%s839_s1 + $0x4] sm:$0xf] (!%p141_p9)  ;;  %vm186_vm2 = vcmask (!%p141_p9), 31744   ;;  %s161_s8 = sand.u32 (!%p141_p9), 1, %s675_s13   ;;  %v445_v18 = vld [vmem:[%s840_s2 + $0x8] sm:$0xff] (!%p141_p9) }
   0xf   : > { %567 = vmatpush3.msk.msra.mxu0 (!%p141_p9), %vm193_vm0, %v183_v0  ;;  %v174_v4 = vshrl.u32 (!%p141_p9), %v173_v1, 7  ;;  %561 = vmatprep.subr.msk.mxu1 (!%p141_p9), %vm193_vm0, %v534_v3  ;;  %s531_s9 = sshll.u32 (!%p141_p9), %s161_s8, 4  ;;  %s551_s20 = sshll.u32 (!%p141_p9), %s729_s16, 8  ;;  %v444_v21 = vld [vmem:[%s840_s2] sm:$0xff] (!%p141_p9)  ;;  %vm448_vm4 = vcmask (!%p141_p9), 261120  }
  0x10   : > { %571 = vmatprep.subr.msk.mxu0 (!%p141_p9), %vm193_vm0, %v541_v2  ;;  %562 = vmatpush3.msk.msra.mxu1 (!%p141_p9), %vm193_vm0, %v534_v3  ;;  %s163_s17 = scalar_lea.vmem (!%p141_p9), [#allocation2], %s531_s9  ;;  %s793_s28 = scalar_lea.hbm (!%p141_p9), %s841_s3, %s551_s20 }
  0x11   : > { %vm175_vm1 = vcmp.lt.s32.totalorder (!%p141_p9), %v174_v4, 1  ;;  %vm180_vm3 = vcmp.lt.s32.totalorder (!%p141_p9), %v174_v4, 7  ;;  %s465_s19 = sshll.u32 (!%p141_p9), %s163_s17, 4  ;;  %s795_s19 = int_to_ptr.vmem [resolvable:$true] %s465_s19 }
  0x12   : > { %s621_s29 = scalar_lea.vmem (!%p141_p9), %s795_s19, 256 }
  0x13   : > { %p622_p11 = scmp.ne.s32.totalorder (!%p141_p9), %s795_s19, %s621_s29 }
  0x15   : > { %s165_s30 = scalar_select %p164_p10, %s729_s16, 1 }
  0x16   : > { %s797_s16 = scalar_lea.sflag [#allocation3], %s161_s8  ;;  %p623_p12 = pnand %p622_p11, %p746_p5 }
  0x17   : > { %s550_s4 = sshll.u32 %s165_s30, 4  ;;  %s685_s30 = smov [#allocation2]  }
  0x18   : > { %s168_s7 = scalar_lea.vmem %s838_s0, %s550_s4  ;;  %p624_p13 = pneg %p623_p12 }
  0x19   : > { %v169_v5 = vld [vmem:[%s168_s7] sm:$0xff]  ;;  %v170_v6 = vld [vmem:[%s168_s7 + $0x8] sm:$0xff]  ;;  %s625_s4 = sshll.u32 %s685_s30, 4  ;;  %s626_s4 = int_to_ptr.vmem [resolvable:$false] %s625_s4 }
  0x1a   : > { %v171_v7 = vrot.slane %v169_v5, 7  ;;  %v172_v8 = vrot.slane %v170_v6, 7  ;;  %563 = vmatprep.mubr.msk.f32.mxu1 %vm186_vm2, %v169_v5  ;;  %v178_v9 = vrot.slane %v169_v5, 1  ;;  %v179_v10 = vrot.slane %v170_v6, 1  ;;  %s627_s5 = scalar_lea.vmem %s626_s4, 512  ;;  %p628_p0 = scmp.lt.s32.totalorder %s795_s19, %s626_s4 }
  0x1b   : > { %564 = vmatmul.mubr.msk.f32.vlgmr.msra.gmra.mrb[0].mxu1 %vm186_vm2, %v170_v6  ;;  %p629_p1 = scmp.lt.s32.totalorder %s627_s5, %s621_s29 }
  0x1c   : > { %v177_v11 = vsel %vm175_vm1, %v172_v8, %v171_v7  ;;  %v176_v12 = vsel %vm175_vm1, %v171_v7, %v172_v8  ;;  %v181_v13 = vsel %vm180_vm3, %v178_v9, %v179_v10  ;;  %v182_v14 = vsel %vm180_vm3, %v179_v10, %v178_v9 }
  0x1d   : > { %568 = vmatprep.mubr.msk.f32.mxu0 %vm186_vm2, %v177_v11  ;;  %p630_p2 = por %p629_p1, %p628_p0 }
  0x1e   : > { %569 = vmatmul.mubr.msk.f32.vlgmr.msra.gmra.mrb[0].mxu0 %vm186_vm2, %v176_v12 }
  0x1f   : > { %572 = vmatpush3.msk.msra.mxu0 %vm193_vm0, %v541_v2  ;;  %573 = vmatprep.mubr.msk.f32.mxu0 %vm186_vm2, %v181_v13  ;;  %p631_p3 = pnand %p630_p2, %p624_p13 }
  0x26   : > { %574 = vmatmul.mubr.msk.f32.vlgmr.msra.gmra.mrb[0].mxu0 %vm186_vm2, %v182_v14 }
  0xee   : > { %v565_v15 = vpop.f32.mrb[0].mxu1 }
  0xef   : > { %v263_v16 = vpop.f32.mrb[1].mxu1 }
  0xf9   : > { %v575_v17 = vpop.f32.mrb[0].mxu0 }
  0xfa   : > { %v576_v19 = vadd.f32 %v575_v17, %v565_v15  ;;  %v433_v20 = vpop.f32.mrb[1].mxu0 }
  0xfb   : > { %v577_v22 = vadd.f32 %v433_v20, %v263_v16 }
  0xfc   : > { %v447_v23 = vadd.f32 %v576_v19, %v445_v18 }
  0xfd   : > { %v446_v24 = vadd.f32 %v577_v22, %v444_v21 }
  0xfe   : > { %450 = vst.msk [vmem:[%s163_s17 + $0x8] sm:$0xff] %vm448_vm4, %v447_v23 }
  0xff   : > { %449 = vst.msk [vmem:[%s163_s17] sm:$0xff] %vm448_vm4, %v446_v24 }
 0x100   : > { %634 = shalt.err (!%p631_p3)
}
 0x101   : > { %s635_s6 = scalar_lea.hbm %s793_s28, 256  ;;  %s639_s9 = scalar_lea.hbm %s841_s3, 512 }
 0x102   : > { %p636_p4 = scmp.ne.s32.totalorder %s793_s28, %s635_s6  ;;  %p640_p9 = scmp.lt.u32.totalorder %s793_s28, %s841_s3 }
 0x103   : > { %p641_p10 = scmp.lt.u32.totalorder %s639_s9, %s635_s6  ;;  %p643_p12 = scmp.lt.u32.totalorder %s635_s6, %s793_s28 }
 0x104   : > { %p637_p7 = pnand %p636_p4, %p746_p5 }
 0x105   : > { %p642_p11 = por %p641_p10, %p640_p9 }
 0x106   : > { %p638_p8 = pneg %p637_p7 }
 0x107   : > { %p644_p13 = por %p643_p12, %p642_p11 }
 0x109   : > { %p645_p0 = pnand %p644_p13, %p638_p8 }
 0x10b   : > { %648 = shalt.err (!%p645_p0)
}
 0x10c   : > { %s686_s17 = smov 128   ;;  %s687_s20 = smov 8  }
 0x10d   : > { %580 = dma.vmem_to_hbm [thread:$0]  (%p746_p5), %s795_s19, 256, %s793_s28, %s797_s16, %s686_s17, %s686_s17, %s687_s20  }
 0x10e PF: > { %p586_p1 = scmp.ge.s32.totalorder %s683_s15, 2  ;;  %s480_s24 = sand.u32 1, %s671_s12  }
 0x10f   : > { %s481_s25 = scalar_lea.sflag [#allocation3], %s480_s24 }
 0x110   : > { %p583_p2 = pnand %p586_p1, %p750_p6 }
 0x112   : > { %666 = dma.done.wait (!%p583_p2), %s481_s25, 256  }
 0x113   : > { %668 = vsyncadd (!%p583_p2), %s481_s25, 4294967040  ;;  %p13_p3 = scmp.ge.s32.totalorder %s733_s18, 4   ;;  %s844_s12 = smov %s675_s13 }
 0x114   : > { %s845_s13 = smov %s679_s14  ;;  %s846_s14 = smov %s744_s21 }
 0x115   : > { %s847_s15 = smov %s733_s18  ;;  %15 = sbr.rel (!%p13_p3) target bundleno = 3 (0x3), region = 69 }
 0x11c   :  { %486 = vsyncpa [#allocation3], 1 }
 0x11d   :  { %488 = vsyncpa [#allocation3 + $0x1], 1 }

</bundles_post_ra>
